<compile_context>
chip_gen: v7x
topology: tpu7x:2x2x1
jax: 0.10.0
libtpu: 0.0.40
codegen_flags: <defaults>
</compile_context>

<pallas_src>
import functools

import jax
import jax.numpy as jnp
from jax import lax
from jax.experimental import pallas as pl
from jax.experimental.pallas import tpu as pltpu


def _tpu_generation():
    """Best-effort TPU generation sniff: 7 (v7x), 6, 5, or 0 (unknown)."""
    try:
        kind = jax.devices()[0].device_kind.lower()
    except Exception:
        return 0
    if "v7" in kind or "7x" in kind:
        return 7
    if "v6" in kind:
        return 6
    if "v5" in kind:
        return 5
    return 0


def _default_config():
    gen = _tpu_generation()
    if gen == 7:
        # 2 TensorCores/chip -> parallel chunk axis; 64 MiB VMEM/TC -> moderate blocks,
        # leave headroom for compiler-managed f32 temporaries of block size.
        return dict(num_chunks=2, per_buf_bytes=6 * 1024 * 1024,
                    vmem_limit=48 * 1024 * 1024)
    if gen in (5, 6):
        # Single TC, 128 MiB physical VMEM -> bigger blocks, no chunk axis.
        return dict(num_chunks=1, per_buf_bytes=8 * 1024 * 1024,
                    vmem_limit=80 * 1024 * 1024)
    # Unknown generation (v4, interpret, ...) -> conservative defaults.
    return dict(num_chunks=1, per_buf_bytes=4 * 1024 * 1024,
                vmem_limit=32 * 1024 * 1024)


def _label_smoothing_kernel(x_ref, tgt_ref, out_ref, acc_ref, *,
                            size, padding_idx, smoothing, n_true, tile_n,
                            tiles_per_chunk):
    # x_ref:   (tile_n, C) logits (native dtype) in VMEM  [ragged last block: tail rows garbage]
    # tgt_ref: (n_rows_grid, 1) int32 targets, grid-resident in VMEM
    # out_ref: (1, 8, 128) f32 per-chunk partial-sum block (lane-dense writeback)
    # acc_ref: (tile_n, 1) f32 VMEM accumulator (reduced to scalar only at finalize)
    ci = pl.program_id(0)            # chunk axis ("parallel"; megacore on v7x)
    ti = pl.program_id(1)            # row-tile axis ("arbitrary"; on-chip reduction)

    @pl.when(ti == 0)
    def _():
        acc_ref[...] = jnp.zeros_like(acc_ref)

    tile_idx = ci * tiles_per_chunk + ti
    row0 = pl.multiple_of(tile_idx * tile_n, 8)          # tile_n is a multiple of 8
    tgt = tgt_ref[pl.ds(row0, tile_n), :]                # (tile_n, 1) int32

    x = x_ref[...].astype(jnp.float32)                   # compute in f32 even for bf16 inputs
    tn, c = x.shape

    confidence = jnp.float32(1.0 - smoothing)
    smooth_val = jnp.float32(smoothing / (size - 2))

    # Numerically stable log-sum-exp along the class (lane) axis.
    m = jnp.max(x, axis=1, keepdims=True)
    lse = m + jnp.log(jnp.sum(jnp.exp(x - m), axis=1, keepdims=True))    # (tn, 1)

    # Valid true_dist rows sum to 1, so sum_c td*logp = sum_c td*x - lse, and sum_c td*x
    # collapses to one fused weighted lane reduction minus the static padding column.
    col = lax.broadcasted_iota(jnp.int32, (tn, c), 1)
    w = jnp.where(col == tgt, confidence, smooth_val)
    wsum = jnp.sum(w * x, axis=1, keepdims=True)                          # (tn, 1)
    x_pad = x[:, padding_idx:padding_idx + 1]                             # static column slice
    nll = lse - wsum + smooth_val * x_pad                                 # per-row loss

    # Mask: rows whose target is padding_idx, tail rows of the ragged last block, and
    # clamped duplicate tiles (their global_row >= n_true).  jnp.where is a select, so
    # garbage/NaN in masked rows never propagates.
    global_row = tile_idx * tile_n + lax.broadcasted_iota(jnp.int32, (tn, 1), 0)
    valid = jnp.logical_and(global_row < n_true, tgt != jnp.int32(padding_idx))
    acc_ref[...] += jnp.where(valid, nll, 0.0)

    @pl.when(ti == pl.num_programs(1) - 1)
    def _():
        # Lane-dense writeback: broadcast the chunk partial across its (8, 128) block.
        out_ref[...] = jnp.full(out_ref.shape, jnp.sum(acc_ref[...]), dtype=out_ref.dtype)


def label_smoothing_loss(x, target, *, size, padding_idx, smoothing,
                         tile_n=None, num_chunks=None):
    n, c = x.shape
    assert c == size
    assert size > 2, "smoothing / (size - 2) is undefined for size <= 2"

    cfg = _default_config()
    if num_chunks is None:
        num_chunks = cfg["num_chunks"]

    itemsize = jnp.dtype(x.dtype).itemsize
    sublane = 8 if itemsize >= 4 else 16                  # bf16 packs 16 rows / vreg
    if tile_n is None:
        # Largest row tile whose (tile_n, C) logits block fits the per-buffer budget
        # (double-buffered by the pipeline); no artificial row cap.
        tile_n = (cfg["per_buf_bytes"] // max(1, c * itemsize)) // sublane * sublane
    tile_n = max(sublane, (int(tile_n) // sublane) * sublane)
    # Never taller than the rows one chunk actually owns.
    rows_per_chunk = pl.cdiv(n, max(1, num_chunks))
    max_useful = ((rows_per_chunk + sublane - 1) // sublane) * sublane
    tile_n = max(sublane, min(tile_n, max_useful))

    total_tiles = pl.cdiv(n, tile_n)
    num_chunks = max(1, min(num_chunks, total_tiles))
    tiles_per_chunk = pl.cdiv(total_tiles, num_chunks)
    n_rows_grid = num_chunks * tiles_per_chunk * tile_n
    last_block = total_tiles - 1

    # Only the tiny int32 targets are padded (4*N bytes); the (N, C) logits are NOT copied.
    tgt2d = jnp.pad(target.astype(jnp.int32), (0, n_rows_grid - n),
                    constant_values=padding_idx).reshape(n_rows_grid, 1)

    kernel = functools.partial(
        _label_smoothing_kernel,
        size=size, padding_idx=padding_idx, smoothing=smoothing,
        n_true=n, tile_n=tile_n, tiles_per_chunk=tiles_per_chunk,
    )

    partials = pl.pallas_call(
        kernel,
        out_shape=jax.ShapeDtypeStruct((num_chunks, 8, 128), jnp.float32),
        grid_spec=pltpu.PrefetchScalarGridSpec(
            num_scalar_prefetch=0,
            grid=(num_chunks, tiles_per_chunk),
            in_specs=[
                # Logits in their NATIVE dtype; clamp duplicate tail tiles to the last
                # real block (their rows are fully masked in-kernel).
                pl.BlockSpec(
                    (tile_n, c),
                    lambda ci, ti: (jnp.minimum(ci * tiles_per_chunk + ti, last_block), 0)),
                # Targets: grid-resident (one DMA, constant block index), sliced in-kernel.
                pl.BlockSpec((n_rows_grid, 1), lambda ci, ti: (0, 0)),
            ],
            out_specs=pl.BlockSpec((1, 8, 128), lambda ci, ti: (ci, 0, 0)),
            scratch_shapes=[pltpu.VMEM((tile_n, 1), jnp.float32)],
        ),
        compiler_params=pltpu.CompilerParams(
            dimension_semantics=("parallel", "arbitrary"),
            vmem_limit_bytes=cfg["vmem_limit"],
        ),
    )(x, tgt2d)

    # Tiny epilogue in XLA: sum per-chunk partials, divide by the TRUE batch size.
    return jnp.sum(partials[:, 0, 0]) / jnp.float32(n)


def _reference_loss(x, target, *, size, padding_idx, smoothing):
    # Pure-JAX reference for validation (materialized true_dist).
    n, c = x.shape
    logp = jax.nn.log_softmax(x.astype(jnp.float32), axis=1)
    col = jnp.arange(c)[None, :]
    tgt = target[:, None]
    td = jnp.where(col == tgt, 1.0 - smoothing, smoothing / (size - 2))
    td = jnp.where(col == padding_idx, 0.0, td)
    td = jnp.where(tgt == padding_idx, 0.0, td)
    return -jnp.sum(td * logp) / n


if __name__ == "__main__":
    SIZE = 128          # vocabulary / class count (lane-dense multiple of 128)
    PADDING_IDX = 0
    SMOOTHING = 0.1
    N = 61              # token positions; NOT a multiple of the tile -> exercises tail masking

    key = jax.random.PRNGKey(0)
    kx, kt = jax.random.split(key)
    x_f32 = jax.random.normal(kx, (N, SIZE), dtype=jnp.float32)
    target = jax.random.randint(kt, (N,), 0, SIZE, dtype=jnp.int32)
    target = target.at[3].set(PADDING_IDX)   # exercise the padded-row mask

    # f32 logits; tile_n=24, num_chunks=2 -> 3 real tiles over a 2x2 grid: exercises the
    # ragged last tile, the clamped duplicate tile, and the padded-target rows.
    loss = label_smoothing_loss(
        x_f32, target, size=SIZE, padding_idx=PADDING_IDX, smoothing=SMOOTHING,
        tile_n=24, num_chunks=2,
    )
    loss = jax.block_until_ready(loss)
    ref = _reference_loss(x_f32, target, size=SIZE, padding_idx=PADDING_IDX,
                          smoothing=SMOOTHING)
    assert jnp.allclose(loss, ref, rtol=1e-5, atol=1e-5), (loss, ref)

    # bf16 logits with fully automatic (generation-dependent) tiling; compute stays f32.
    x_bf16 = x_f32.astype(jnp.bfloat16)
    loss_bf16 = label_smoothing_loss(
        x_bf16, target, size=SIZE, padding_idx=PADDING_IDX, smoothing=SMOOTHING,
    )
    loss_bf16 = jax.block_until_ready(loss_bf16)
    ref_bf16 = _reference_loss(x_bf16.astype(jnp.float32), target, size=SIZE,
                               padding_idx=PADDING_IDX, smoothing=SMOOTHING)
    assert jnp.allclose(loss_bf16, ref_bf16, rtol=1e-4, atol=1e-4), (loss_bf16, ref_bf16)

    # TODO(synk): the PyTorch module also caches `self.true_dist` as a side effect; the
    # kernel intentionally never materializes it (algebraic form), so it is not returned.

    print("KERNEL_OK")
</pallas_src>

<mosaic_0001>
module attributes {stable_mosaic.version = 11 : i64} {
  func.func @_label_smoothing_kernel(%arg0: i32, %arg1: i32, %arg2: memref<24x128xf32, #tpu.memory_space<vmem>>, %arg3: memref<96x1xi32, #tpu.memory_space<vmem>>, %arg4: memref<1x8x128xf32, #tpu.memory_space<vmem>>, %arg5: memref<24x1xf32, #tpu.memory_space<vmem>>) attributes {dimension_semantics = [#tpu.dimension_semantics<parallel>, #tpu.dimension_semantics<arbitrary>], iteration_bounds = array<i64: 2, 2>, scalar_prefetch = 0 : i64, scratch_operands = 1 : i64, tpu.core_type = #tpu.core_type<tc>, window_params = [{transform_indices = @transform_0, window_bounds = array<i64: 24, 128>}, {pipeline_mode = #tpu.pipeline_mode<synchronous>, transform_indices = @transform_1, window_bounds = array<i64: 96, 1>}, {transform_indices = @transform_2, window_bounds = array<i64: 1, 8, 128>}]} {
    %c0_i32 = arith.constant 0 : i32
    %0 = arith.cmpi eq, %arg1, %c0_i32 : i32
    %1 = arith.extui %0 : i1 to i32
    %c0_i32_0 = arith.constant 0 : i32
    %2 = arith.cmpi ne, %1, %c0_i32_0 : i32
    scf.if %2 {
      %cst_16 = arith.constant 0.000000e+00 : f32
      %50 = vector.broadcast %cst_16 : f32 to vector<24x1xf32>
      %c0_17 = arith.constant 0 : index
      %c0_18 = arith.constant 0 : index
      %51 = vector.load %arg5[%c0_17, %c0_18] : memref<24x1xf32, #tpu.memory_space<vmem>>, vector<24x1xf32>
      tpu.vector_store %arg5[%c0_17, %c0_18], %50 {strides = array<i32>} : memref<24x1xf32, #tpu.memory_space<vmem>>, vector<24x1xf32>,
    } else {
    }
    %c2_i32 = arith.constant 2 : i32
    %3 = arith.muli %arg0, %c2_i32 : i32
    %4 = arith.addi %3, %arg1 : i32
    %c24_i32 = arith.constant 24 : i32
    %5 = arith.muli %4, %c24_i32 : i32
    %6 = tpu.assume_multiple %5, 8 : i32
    %7 = arith.index_cast %6 : i32 to index
    %c0 = arith.constant 0 : index
    %8 = vector.load %arg3[%7, %c0] : memref<96x1xi32, #tpu.memory_space<vmem>>, vector<24x1xi32>
    %c0_1 = arith.constant 0 : index
    %c0_2 = arith.constant 0 : index
    %9 = vector.load %arg2[%c0_1, %c0_2] : memref<24x128xf32, #tpu.memory_space<vmem>>, vector<24x128xf32>
    %cst = arith.constant dense<0xFF800000> : vector<24xf32>
    %10 = vector.multi_reduction <maximumf>, %9, %cst [1] : vector<24x128xf32> to vector<24xf32>
    %11 = vector.shape_cast %10 : vector<24xf32> to vector<24x1xf32>
    %12 = vector.broadcast %11 : vector<24x1xf32> to vector<24x128xf32>
    %13 = arith.subf %9, %12 : vector<24x128xf32>
    %14 = math.exp %13 : vector<24x128xf32>
    %cst_3 = arith.constant dense<0.000000e+00> : vector<24xf32>
    %15 = vector.multi_reduction <add>, %14, %cst_3 [1] : vector<24x128xf32> to vector<24xf32>
    %16 = vector.shape_cast %15 : vector<24xf32> to vector<24x1xf32>
    %17 = math.log %16 : vector<24x1xf32>
    %18 = arith.addf %11, %17 : vector<24x1xf32>
    %19 = tpu.iota {dimensions = array<i32: 1>} : vector<24x128xi32>
    %20 = vector.broadcast %8 : vector<24x1xi32> to vector<24x128xi32>
    %21 = arith.cmpi eq, %19, %20 : vector<24x128xi32>
    %cst_4 = arith.constant 0.899999976 : f32
    %cst_5 = arith.constant 7.93650805E-4 : f32
    %22 = vector.broadcast %cst_4 : f32 to vector<24x128xf32>
    %23 = vector.broadcast %cst_5 : f32 to vector<24x128xf32>
    %24 = arith.select %21, %22, %23 : vector<24x128xi1>, vector<24x128xf32>
    %25 = arith.mulf %24, %9 : vector<24x128xf32>
    %cst_6 = arith.constant dense<0.000000e+00> : vector<24xf32>
    %26 = vector.multi_reduction <add>, %25, %cst_6 [1] : vector<24x128xf32> to vector<24xf32>
    %27 = vector.shape_cast %26 : vector<24xf32> to vector<24x1xf32>
    %28 = vector.extract_strided_slice %9 {offsets = [0, 0], sizes = [24, 1], strides = [1, 1]} : vector<24x128xf32> to vector<24x1xf32>
    %29 = arith.subf %18, %27 : vector<24x1xf32>
    %cst_7 = arith.constant 7.93650805E-4 : f32
    %30 = vector.broadcast %cst_7 : f32 to vector<24x1xf32>
    %31 = arith.mulf %30, %28 : vector<24x1xf32>
    %32 = arith.addf %29, %31 : vector<24x1xf32>
    %c24_i32_8 = arith.constant 24 : i32
    %33 = arith.muli %4, %c24_i32_8 : i32
    %34 = tpu.iota {dimensions = array<i32: 0>} : vector<24x1xi32>
    %35 = vector.broadcast %33 : i32 to vector<24x1xi32>
    %36 = arith.addi %35, %34 : vector<24x1xi32>
    %c61_i32 = arith.constant 61 : i32
    %37 = vector.broadcast %c61_i32 : i32 to vector<24x1xi32>
    %38 = arith.cmpi slt, %36, %37 : vector<24x1xi32>
    %c0_i32_9 = arith.constant 0 : i32
    %39 = vector.broadcast %c0_i32_9 : i32 to vector<24x1xi32>
    %40 = arith.cmpi ne, %8, %39 : vector<24x1xi32>
    %41 = arith.andi %38, %40 : vector<24x1xi1>
    %c0_10 = arith.constant 0 : index
    %c0_11 = arith.constant 0 : index
    %42 = vector.load %arg5[%c0_10, %c0_11] : memref<24x1xf32, #tpu.memory_space<vmem>>, vector<24x1xf32>
    %cst_12 = arith.constant 0.000000e+00 : f32
    %43 = vector.broadcast %cst_12 : f32 to vector<24x1xf32>
    %44 = arith.select %41, %32, %43 : vector<24x1xi1>, vector<24x1xf32>
    %45 = arith.addf %42, %44 : vector<24x1xf32>
    %c0_13 = arith.constant 0 : index
    %c0_14 = arith.constant 0 : index
    %46 = vector.load %arg5[%c0_13, %c0_14] : memref<24x1xf32, #tpu.memory_space<vmem>>, vector<24x1xf32>
    tpu.vector_store %arg5[%c0_13, %c0_14], %45 {strides = array<i32>} : memref<24x1xf32, #tpu.memory_space<vmem>>, vector<24x1xf32>,
    %c1_i32 = arith.constant 1 : i32
    %47 = arith.cmpi eq, %arg1, %c1_i32 : i32
    %48 = arith.extui %47 : i1 to i32
    %c0_i32_15 = arith.constant 0 : i32
    %49 = arith.cmpi ne, %48, %c0_i32_15 : i32
    scf.if %49 {
      %c0_16 = arith.constant 0 : index
      %c0_17 = arith.constant 0 : index
      %50 = vector.load %arg5[%c0_16, %c0_17] : memref<24x1xf32, #tpu.memory_space<vmem>>, vector<24x1xf32>
      %51 = vector.shape_cast %50 : vector<24x1xf32> to vector<1x24x1xf32>
      %cst_18 = arith.constant dense<0.000000e+00> : vector<1xf32>
      %52 = vector.multi_reduction <add>, %51, %cst_18 [1, 2] : vector<1x24x1xf32> to vector<1xf32>
      %53 = vector.shape_cast %52 : vector<1xf32> to vector<1x1x1xf32>
      %54 = vector.extract %53[0, 0, 0] : f32 from vector<1x1x1xf32>
      %55 = vector.broadcast %54 : f32 to vector<1x8x128xf32>
      %c0_19 = arith.constant 0 : index
      %c0_20 = arith.constant 0 : index
      %c0_21 = arith.constant 0 : index
      %56 = vector.load %arg4[%c0_19, %c0_20, %c0_21] : memref<1x8x128xf32, #tpu.memory_space<vmem>>, vector<1x8x128xf32>
      tpu.vector_store %arg4[%c0_19, %c0_20, %c0_21], %55 {strides = array<i32>} : memref<1x8x128xf32, #tpu.memory_space<vmem>>, vector<1x8x128xf32>,
    } else {
    }
    return
  }
  func.func @transform_0(%arg0: i32, %arg1: i32) -> (i32, i32) {
    %c2_i32 = arith.constant 2 : i32
    %0 = arith.muli %arg0, %c2_i32 : i32
    %1 = arith.addi %0, %arg1 : i32
    %c2_i32_0 = arith.constant 2 : i32
    %2 = arith.minsi %1, %c2_i32_0 : i32
    %c0_i32 = arith.constant 0 : i32
    %c0_i32_1 = arith.constant 0 : i32
    return %2, %c0_i32 : i32, i32
  }
  func.func @transform_1(%arg0: i32, %arg1: i32) -> (i32, i32) {
    %c0_i32 = arith.constant 0 : i32
    %c0_i32_0 = arith.constant 0 : i32
    %c0_i32_1 = arith.constant 0 : i32
    return %c0_i32, %c0_i32_0 : i32, i32
  }
  func.func @transform_2(%arg0: i32, %arg1: i32) -> (i32, i32, i32) {
    %c0_i32 = arith.constant 0 : i32
    %c0_i32_0 = arith.constant 0 : i32
    %c0_i32_1 = arith.constant 0 : i32
    return %arg0, %c0_i32, %c0_i32_0 : i32, i32, i32
  }
}

</mosaic_0001>

<bundles_post_ra>
// kernel: tpu_custom_call.1
= control target key start
LH: loop header
LB: loop body
LE: loop exit
PB: predicated region body
PF: predicated region fallthrough
CT: control target
= control target key end

     0   :  { %7 = vsyncpa [#allocation4], 0  ;;  %s834_s0 = inlined_call_operand.vmem [shape: f32[61,128], index: 0, kind: input, shape index: {}]   ;;  %s835_s1 = inlined_call_operand.vmem [shape: s32[96,1], index: 1, kind: input, shape index: {}]   ;;  %s836_s2 = inlined_call_operand.hbm [shape: f32[2,8,128], index: 2, kind: output, shape index: {}]  }
   0x1   :  { %9 = vsyncpa [#allocation4 + $0x1], 0  ;;  %s650_s9 = smov 0   ;;  %s652_s10 = smov 0  }
   0x2   :  { %s654_s11 = smov 0   ;;  %s656_s12 = smov 0  }
   0x3   :  { %s658_s13 = smov 0   ;;  %s660_s14 = smov 0  }
   0x4   :  { %s662_s15 = smov 0   ;;  %s664_s16 = smov 0  }
   0x5 LB: > { %s428_s17 = sadd.s32 4294967295, %s629_s16   ;;  %s429_s18 = sadd.s32 4294967294, %s629_s16   ;;  %s629_s16 = sphi %s664_s16, %s15_s16   ;;  %s625_s15 = sphi %s662_s15, %s851_s15   ;;  %s621_s14 = sphi %s660_s14, %s850_s14   ;;  %s617_s13 = sphi %s658_s13, %s849_s13   ;;  %s613_s12 = sphi %s656_s12, %s848_s12   ;;  %s609_s11 = sphi %s654_s11, %s847_s11   ;;  %s605_s10 = sphi %s652_s10, %s846_s10   ;;  %s601_s9 = sphi %s650_s9, %s845_s9  }
   0x6   : > { %s24_s19 = sadd.s32 1, %s621_s14  ;;  %s27_s20 = sadd.s32 1, %s625_s15 }
   0x7   : > { %p25_p0 = scmp.ge.s32.totalorder %s24_s19, 2  ;;  %p99_p1 = scmp.ne.s32.totalorder %s609_s11, %s605_s10 }
   0x8   : > { %p100_p2 = scmp.eq.s32.totalorder %s428_s17, 3  ;;  %p105_p4 = scmp.ne.s32.totalorder %s605_s10, %s601_s9 }
   0x9   : > { %s853_s19 = smov (%p25_p0, %s24_s19), 0  ;;  %s855_s20 = smov (!%p25_p0, %s27_s20), %s625_s15 }
   0xa   : > { %p699_p3 = por %p100_p2, %p99_p1  ;;  %p29_p5 = scmp.ge.s32.totalorder %s855_s20, 2 }
   0xb   : > { %p106_p6 = scmp.eq.s32.totalorder %s429_s18, 3  ;;  %p434_p7 = scmp.ge.s32.totalorder %s629_s16, 1 }
   0xc   : > { %p152_p8 = scmp.lt.s32.totalorder %s629_s16, 5  ;;  %s857_s20 = smov (%p29_p5, %s855_s20), 0 }
   0xd   : > { %p709_p9 = por %p106_p6, %p105_p4  ;;  %s86_s23 = ssub.s32 %s625_s15, %s857_s20 }
   0xe   : > { %p153_p10 = pnand %p434_p7, %p152_p8  ;;  %s89_s24 = sadd.s32 1, %s609_s11 }
   0xf   : > { %p87_p11 = scmp.eq.s32.totalorder %s86_s23, 0  ;;  %s179_s26 = sand.u32 (!%p153_p10), 1, %s605_s10  }
  0x10   : > { %156 = sbr.rel (%p153_p10) target bundleno = 602 (0x25a), region = 28  ;;  %s436_s27 = sshll.u32 (!%p153_p10), %s617_s13, 1 }
  0x11   : > { %s717_s25 = scalar_select %p87_p11, %s609_s11, %s89_s24  }
  0x12   : > { %s723_s28 = sshll.u32 (!%p153_p10), %s179_s26, 3  ;;  %s183_s29 = sadd.s32 (!%p153_p10), %s613_s12, %s436_s27 }
  0x13   : > { %p184_p12 = scmp.lt.s32.totalorder (!%p153_p10), %s183_s29, 2  ;;  %s181_s8 = scalar_lea.vmem (!%p153_p10), [#allocation3], %s723_s28 }
  0x14   : > { %p438_p0 = scmp.ne.s32.totalorder (!%p153_p10), %s613_s12, 0 }
  0x17   : > { %s185_s30 = scalar_select %p184_p12, %s183_s29, 2 }
  0x18   : > { %vm208_vm0 = vcmask (!%p438_p0), 7168   ;;  %v631_v0 = vmov (!%p438_p0), 0.0  }
  0x19   : > { %s186_s3 = smul.u32 3, %s185_s30  ;;  %209 = vst.msk [vmem:[#allocation2] sm:$0xff] (!%p438_p0), %vm208_vm0, %v631_v0  ;;  %210 = vst.msk [vmem:[#allocation2 + $0x8] sm:$0xff] (!%p438_p0), %vm208_vm0, %v631_v0 }
  0x1a   : > { %207 = sbr.rel (%p438_p0) target bundleno = 33 (0x21), region = 32  ;;  %211 = vst.msk [vmem:[#allocation2 + $0x10] sm:$0xff] (!%p438_p0), %vm208_vm0, %v631_v0 }
  0x1b   : > { %p191_p13 = scmp.lt.s32.totalorder %s186_s3, 7 }
  0x1d   : > { %s859_s3 = smov (!%p191_p13, %s186_s3), 7 }
  0x1e   : > { %s437_s4 = sshll.u32 %s859_s3, 3 }
  0x1f   : > { %s194_s7 = scalar_lea.vmem %s834_s0, %s437_s4 }
  0x21 PF: > { %v731_v1 = vld [vmem:[%s194_s7] sm:$0xff]  ;;  %v733_v2 = vld [vmem:[%s194_s7 + $0x10] sm:$0xff]  ;;  %s214_s17 = smul.u32 24, %s183_s29  ;;  %v252_v3 = vlaneseq  ;;  %v737_v4 = vld [vmem:[%s194_s7 + $0x8] sm:$0xff]  ;;  %v632_v5 = vmov 0   ;;  %vm313_vm13 = vcmask 7168  }
  0x22   : > { %222 = vmax.xlane.f32.xlu0 %v731_v1  ;;  %226 = vmax.xlane.f32.xlu1 %v733_v2  ;;  %v633_v33 = vmov 0.0007936508   ;;  %v281_v49 = vmul.f32 0.0007936508, %v731_v1  ;;  %v304_v56 = vld [vmem:[#allocation2] sm:$0xff]  ;;  %p440_p1 = scmp.ne.s32.totalorder %s613_s12, 1 }
  0x23   : > { %521 = vset.pattern.permute.xlu1 %v632_v5  ;;  %s215_s24 = scalar_lea.vmem %s835_s1, %s214_s17  ;;  %v288_v6 = vshrl.u32 %v252_v3, 7  ;;  %v291_v7 = vstv %s214_s17  ;;  %522 = vset.pattern.permute.xlu0 %v632_v5  ;;  %v253_v28 = vand.u32 127, %v252_v3  ;;  %v282_v59 = vmul.f32 0.0007936508, %v737_v4  ;;  %v305_v5 = vld [vmem:[#allocation2 + $0x8] sm:$0xff] }
  0x24   : > { %v216_v8 = vld [vmem:[%s215_s24] sm:$0xff]  ;;  %v218_v11 = vld [vmem:[%s215_s24 + $0x10] sm:$0xff]  ;;  %v217_v14 = vld [vmem:[%s215_s24 + $0x8] sm:$0xff]  ;;  %v283_v61 = vmul.f32 0.0007936508, %v733_v2 }
  0x25   : > { %v292_v9 = vadd.s32 %v291_v7, %v288_v6  ;;  %vm298_vm1 = vcmp.ne.s32.totalorder %v216_v8, 0  ;;  %v290_v10 = vadd.s32 16, %v288_v6  ;;  %v289_v12 = vadd.s32 8, %v288_v6 }
  0x26   : > { %224 = vmax.xlane.f32.xlu0 %v737_v4  ;;  %vm300_vm3 = vcmp.ne.s32.totalorder %v218_v11, 0  ;;  %vm299_vm5 = vcmp.ne.s32.totalorder %v217_v14, 0 }
  0x27   : > { %vm295_vm2 = vcmp.lt.s32.totalorder %v292_v9, 61  ;;  %v294_v13 = vadd.s32 %v291_v7, %v290_v10  ;;  %v293_v16 = vadd.s32 %v291_v7, %v289_v12  ;;  %v306_v7 = vld [vmem:[#allocation2 + $0x10] sm:$0xff] }
  0x28   : > { %vm743_vm4 = vmand %vm295_vm2, %vm298_vm1 }
  0x29   : > { %vm297_vm6 = vcmp.lt.s32.totalorder %v294_v13, 61  ;;  %vm296_vm8 = vcmp.lt.s32.totalorder %v293_v16, 61 }
  0x2a   : > { %vm747_vm7 = vmand %vm297_vm6, %vm300_vm3 }
  0x2b   : > { %vm751_vm9 = vmand %vm296_vm8, %vm299_vm5 }
  0x33   : > { %255 = vperm.xlu1 %521, %v216_v8  }
  0x37   : > { %261 = vperm.xlu1 %521, %v218_v11  }
  0x3c   : > { %258 = vperm.xlu0 %522, %v217_v14  }
  0xaf   : > { %v223_v19 = vpop.xlane.xlu0 %222  ;;  %v227_v20 = vpop.xlane.xlu1 %226 }
  0xb0   : > { %v228_v21 = vsub.f32 %v731_v1, %v223_v19  ;;  %v230_v22 = vsub.f32 %v733_v2, %v227_v20 }
  0xb2   : > { %v231_v23 = vmul.f32 1.442695, %v228_v21  ;;  %v235_v24 = vmul.f32 1.442695, %v230_v22 }
  0xb3   : > { %v225_v25 = vpop.xlane.xlu0 %224  ;;  %v256_v29 = vpop.permute.xlu1 %255 }
  0xb4   : > { %523 = vpow2.f32 %v231_v23  ;;  %v229_v26 = vsub.f32 %v737_v4, %v225_v25  ;;  %vm263_vm10 = vcmp.eq.s32.totalorder %v253_v28, %v256_v29 }
  0xb5   : > { %525 = vpow2.f32 %v235_v24  ;;  %v266_v34 = vsel %vm263_vm10, 0.9, %v633_v33 }
  0xb6   : > { %v233_v27 = vmul.f32 1.442695, %v229_v26  ;;  %v269_v36 = vmul.f32 %v266_v34, %v731_v1 }
  0xb7   : > { %v262_v37 = vpop.permute.xlu1 %261 }
  0xb8   : > { %527 = vpow2.f32 %v233_v27  ;;  %vm265_vm12 = vcmp.eq.s32.totalorder %v253_v28, %v262_v37 }
  0xb9   : > { %v268_v40 = vsel %vm265_vm12, 0.9, %v633_v33 }
  0xba   : > { %v271_v41 = vmul.f32 %v268_v40, %v733_v2 }
  0xbb   : > { %v259_v31 = vpop.permute.xlu0 %258 }
  0xbc   : > { %vm264_vm11 = vcmp.eq.s32.totalorder %v253_v28, %v259_v31 }
  0xbd   : > { %v267_v38 = vsel %vm264_vm11, 0.9, %v633_v33 }
  0xbe   : > { %v524_v30 = vpop.eup %523  ;;  %v270_v39 = vmul.f32 %v267_v38, %v737_v4 }
  0xbf   : > { %237 = vadd.xlane.f32.xlu1 %v524_v30  ;;  %v526_v32 = vpop.eup %525 }
  0xc2   : > { %v528_v35 = vpop.eup %527 }
  0xc3   : > { %239 = vadd.xlane.f32.xlu0 %v528_v35  ;;  %241 = vadd.xlane.f32.xlu1 %v526_v32 }
  0xc7   : > { %272 = vadd.xlane.f32.xlu1 %v269_v36 }
  0xcb   : > { %274 = vadd.xlane.f32.xlu1 %v270_v39 }
  0xcf   : > { %276 = vadd.xlane.f32.xlu1 %v271_v41 }
 0x14c   : > { %v238_v42 = vpop.xlane.xlu1 %237 }
 0x14d   : > { %529 = vlog2.f32 %v238_v42 }
 0x150   : > { %v240_v43 = vpop.xlane.xlu0 %239  ;;  %v242_v44 = vpop.xlane.xlu1 %241 }
 0x151   : > { %531 = vlog2.f32 %v240_v43 }
 0x152   : > { %533 = vlog2.f32 %v242_v44 }
 0x154   : > { %v273_v45 = vpop.xlane.xlu1 %272 }
 0x157   : > { %v530_v46 = vpop.eup %529 }
 0x158   : > { %v244_v47 = vmul.f32 0.6931472, %v530_v46  ;;  %v275_v50 = vpop.xlane.xlu1 %274 }
 0x15a   : > { %v249_v48 = vadd.f32 %v244_v47, %v223_v19 }
 0x15b   : > { %v532_v51 = vpop.eup %531 }
 0x15c   : > { %v534_v52 = vpop.eup %533  ;;  %v246_v53 = vmul.f32 0.6931472, %v532_v51  ;;  %v278_v54 = vsub.f32 %v249_v48, %v273_v45  ;;  %v277_v0 = vpop.xlane.xlu1 %276 }
 0x15d   : > { %v248_v55 = vmul.f32 0.6931472, %v534_v52 }
 0x15e   : > { %v284_v57 = vadd.f32 %v281_v49, %v278_v54  ;;  %v250_v58 = vadd.f32 %v246_v53, %v225_v25 }
 0x15f   : > { %v251_v60 = vadd.f32 %v248_v55, %v227_v20 }
 0x160   : > { %v307_v62 = vsel %vm743_vm4, %v284_v57, 0.0  ;;  %v279_v63 = vsub.f32 %v250_v58, %v275_v50 }
 0x161   : > { %v310_v1 = vadd.f32 %v307_v62, %v304_v56  ;;  %v280_v3 = vsub.f32 %v251_v60, %v277_v0 }
 0x162   : > { %v285_v6 = vadd.f32 %v282_v59, %v279_v63  ;;  %320 = sbr.rel (%p440_p1) target bundleno = 578 (0x242), region = 36 }
 0x163   : > { %314 = vst.msk [vmem:[#allocation2] sm:$0xff] %vm313_vm13, %v310_v1  ;;  %v286_v8 = vadd.f32 %v283_v61, %v280_v3 }
 0x164   : > { %v308_v4 = vsel %vm751_vm9, %v285_v6, 0.0 }
 0x165   : > { %v311_v9 = vadd.f32 %v308_v4, %v305_v5  ;;  %v309_v2 = vsel %vm747_vm7, %v286_v8, 0.0 }
 0x166   : > { %v312_v10 = vadd.f32 %v309_v2, %v306_v7 }
 0x167   : > { %315 = vst.msk [vmem:[#allocation2 + $0x8] sm:$0xff] %vm313_vm13, %v311_v9 }
 0x168   : > { %316 = vst.msk [vmem:[#allocation2 + $0x10] sm:$0xff] %vm313_vm13, %v312_v10 }
 0x16a   : > { %v321_v11 = vld [vmem:[#allocation2] sm:$0xff] }
 0x16b   : > { %v324_v14 = vsel %vm313_vm13, %v321_v11, 0.0 }
 0x16e   : > { %v322_v12 = vld [vmem:[#allocation2 + $0x8] sm:$0xff] }
 0x16f   : > { %v323_v13 = vld [vmem:[#allocation2 + $0x10] sm:$0xff]  ;;  %v325_v15 = vsel %vm313_vm13, %v322_v12, 0.0 }
 0x170   : > { %v327_v16 = vsel %vm313_vm13, %v323_v13, 0.0  ;;  %v326_v17 = vadd.f32 %v325_v15, %v324_v14 }
 0x172   : > { %v328_v18 = vadd.f32 %v327_v16, %v326_v17 }
 0x174   : > { %329 = vadd.xlane.f32.xlu0 %v328_v18 }
 0x201   : > { %v330_v19 = vpop.xlane.xlu0 %329 }
 0x202   : > { %v331_v20 = vrot.slane %v330_v19, 4 }
 0x204   : > { %v332_v21 = vadd.f32 %v331_v20, %v330_v19 }
 0x206   : > { %v333_v22 = vrot.slane %v332_v21, 2 }
 0x208   : > { %v334_v23 = vadd.f32 %v333_v22, %v332_v21 }
 0x20a   : > { %v335_v24 = vrot.slane %v334_v23, 1 }
 0x20c   : > { %v336_v25 = vadd.f32 %v335_v24, %v334_v23 }
 0x20e   : > { %445 = vpush %v336_v25 }
 0x23f   : > { %s446_s12 = spop %445 }
 0x240   : > { %v338_v26 = vstv %s446_s12 }
 0x241   : > { %339 = vst [vmem:[%s181_s8] sm:$0xff] %v338_v26 }
 0x242 PF: > { %s442_s27 = sshll.u32 %s617_s13, 7  ;;  %s354_s4 = sshll.u32 %s181_s8, 4  ;;  %s355_s4 = int_to_ptr.vmem [resolvable:$true] %s354_s4 }
 0x243   : > { %s783_s3 = scalar_lea.hbm %s836_s2, %s442_s27  ;;  %s341_s5 = scalar_lea.sflag [#allocation4], %s179_s26 }
 0x244   : > { %s535_s6 = scalar_lea.vmem %s355_s4, 128  ;;  %s634_s7 = smov [#allocation3]  }
 0x245   : > { %p536_p2 = scmp.ne.s32.totalorder %s355_s4, %s535_s6  ;;  %s539_s17 = sshll.u32 %s634_s7, 4  ;;  %s540_s17 = int_to_ptr.vmem [resolvable:$false] %s539_s17 }
 0x246   : > { %s541_s18 = scalar_lea.vmem %s540_s17, 256  ;;  %p542_p6 = scmp.lt.s32.totalorder %s355_s4, %s540_s17 }
 0x247   : > { %p537_p4 = pnand %p536_p2, %p699_p3  ;;  %p543_p7 = scmp.lt.s32.totalorder %s541_s18, %s535_s6 }
 0x249   : > { %p538_p5 = pneg %p537_p4  ;;  %p544_p8 = por %p543_p7, %p542_p6 }
 0x24b   : > { %p545_p10 = pnand %p544_p8, %p538_p5 }
 0x24d   : > { %548 = shalt.err (!%p545_p10)
}
 0x24e   : > { %s549_s13 = scalar_lea.hbm %s783_s3, 128  ;;  %s553_s8 = scalar_lea.hbm %s836_s2, 256 }
 0x24f   : > { %p550_p11 = scmp.ne.s32.totalorder %s783_s3, %s549_s13  ;;  %p554_p0 = scmp.lt.u32.totalorder %s783_s3, %s836_s2 }
 0x250   : > { %p555_p1 = scmp.lt.u32.totalorder %s553_s8, %s549_s13  ;;  %p557_p4 = scmp.lt.u32.totalorder %s549_s13, %s783_s3 }
 0x251   : > { %p551_p12 = pnand %p550_p11, %p699_p3 }
 0x252   : > { %p556_p2 = por %p555_p1, %p554_p0 }
 0x253   : > { %p552_p13 = pneg %p551_p12 }
 0x254   : > { %p558_p5 = por %p557_p4, %p556_p2 }
 0x256   : > { %p559_p6 = pnand %p558_p5, %p552_p13 }
 0x258   : > { %562 = shalt.err (!%p559_p6)
}
 0x259   : > { %447 = dma.vmem_to_hbm [thread:$0]  (%p699_p3), %s355_s4, 128, %s783_s3, %s341_s5  }
 0x25a PF: > { %p453_p7 = scmp.ge.s32.totalorder %s629_s16, 2  ;;  %s366_s12 = sand.u32 1, %s601_s9  }
 0x25b   : > { %s367_s27 = scalar_lea.sflag [#allocation4], %s366_s12 }
 0x25c   : > { %p450_p8 = pnand %p453_p7, %p709_p9 }
 0x25e   : > { %596 = dma.done.wait (!%p450_p8), %s367_s27, 128  }
 0x25f   : > { %598 = vsyncadd (!%p450_p8), %s367_s27, 4294967168  ;;  %s15_s16 = sadd.s32 1, %s629_s16   ;;  %s845_s9 = smov %s605_s10 }
 0x260   : > { %p12_p10 = scmp.ge.s32.totalorder %s15_s16, 6   ;;  %s846_s10 = smov %s609_s11 }
 0x261   : > { %s847_s11 = smov %s717_s25  ;;  %s848_s12 = smov %s621_s14 }
 0x262   : > { %s849_s13 = smov %s625_s15  ;;  %s850_s14 = smov %s853_s19 }
 0x263   : > { %s851_s15 = smov %s857_s20  ;;  %14 = sbr.rel (!%p12_p10) target bundleno = 5 (0x5), region = 72 }
 0x26a   :  { %372 = vsyncpa [#allocation4], 1 }
 0x26b   :  { %374 = vsyncpa [#allocation4 + $0x1], 1 }

</bundles_post_ra>
